<compile_context>
chip_gen: v7x
topology: tpu7x:2x2x1
jax: 0.10.0
libtpu: 0.0.40
codegen_flags: <defaults>
</compile_context>

<pallas_src>
import functools

import jax
import jax.numpy as jnp
from jax.experimental import pallas as pl
from jax.experimental.pallas import tpu as pltpu


def _round_up(x, m):
    return ((x + m - 1) // m) * m


def _gelu_erf(x):
    """Exact (erf-form) GELU in f32.

    erf via the Abramowitz & Stegun 7.1.26 rational approximation (max abs error
    ~1.5e-7, i.e. at the f32 precision floor), built only from ops with guaranteed
    Mosaic lowerings (exp / mul / add / div / select).
    """
    z = x * 0.7071067811865476  # x / sqrt(2)
    az = jnp.abs(z)
    t = 1.0 / (1.0 + 0.3275911 * az)
    poly = ((((1.061405429 * t - 1.453152027) * t + 1.421413741) * t
             - 0.284496736) * t + 0.254829592) * t
    erf_abs = 1.0 - poly * jnp.exp(-az * az)
    erf_z = jnp.where(z >= 0.0, erf_abs, -erf_abs)
    return x * 0.5 * (1.0 + erf_z)


def _gelu_tanh(x):
    """tanh-approx GELU: ~3x fewer VALU ops (tanh goes to the EUP slot).

    Numerically different from the exact-erf GELU of the PyTorch module; only use
    when that shift is acceptable (shrinks the VPU-bound j==0 epilogue).
    """
    return 0.5 * x * (1.0 + jnp.tanh(0.7978845608028654 * (x + 0.044715 * x * x * x)))


def _lm_head_kernel(x_ref, wt_ref, bt_ref, g_ref, beta_ref, wd_ref, bv_ref,
                    o_ref, h_scratch, *, eps, use_tanh_gelu):
    # x_ref:     (TM, H)   flattened hidden_states row tile (compute dtype)
    # wt_ref:    (H, H)    transform dense weight, K-major [in, out] layout
    # bt_ref:    (1, H)    transform dense bias
    # g_ref:     (1, H)    LayerNorm gamma
    # beta_ref:  (1, H)    LayerNorm beta
    # wd_ref:    (H, TV)   decoder weight tile, K-major [in, out] layout
    # bv_ref:    (1, TV)   decoder bias tile
    # o_ref:     (TM, TV)  logits tile
    # h_scratch: (TM, H)   transformed rows, persists across the vocab axis
    j = pl.program_id(1)

    # Transform (dense + gelu + LayerNorm): computed once per row tile (at the first
    # vocab step) and kept in VMEM scratch for all vocab tiles of that row block.
    @pl.when(j == 0)
    def _():
        # Plain (1,0) contraction against the K-major weight -> no XLU transpose.
        # Matmul in the operand dtype (bf16 stays bf16 on the MXU), f32 accumulate.
        h = jnp.dot(x_ref[...], wt_ref[...], preferred_element_type=jnp.float32)
        h = h + bt_ref[...].astype(jnp.float32)

        h = _gelu_tanh(h) if use_tanh_gelu else _gelu_erf(h)

        # BertLayerNorm (TF style, eps inside the sqrt), f32 math, lane reduce.
        u = jnp.mean(h, axis=-1, keepdims=True)
        c = h - u
        s = jnp.mean(c * c, axis=-1, keepdims=True)
        hn = c * jax.lax.rsqrt(s + eps)                    # rsqrt -> EUP slot
        hn = g_ref[...].astype(jnp.float32) * hn + beta_ref[...].astype(jnp.float32)

        h_scratch[...] = hn.astype(h_scratch.dtype)

    # Decoder: (TM, H) @ (H, TV) K-major tile, f32 accumulate on the MXU.
    logits = jnp.dot(h_scratch[...], wd_ref[...], preferred_element_type=jnp.float32)
    logits = logits + bv_ref[...].astype(jnp.float32)
    o_ref[...] = logits.astype(o_ref.dtype)


def bert_lm_prediction_head(hidden_states, transform_w, transform_b, ln_weight,
                            ln_bias, decoder_w, decoder_bias, *, eps=1e-12,
                            block_rows=512, block_vocab=512,
                            compute_dtype=None, use_tanh_gelu=False):
    """hidden_states: [B, S, H]; transform_w: [H, H]; decoder_w: [V, H] (PyTorch [out, in]).

    Handles arbitrary N = B*S and V via zero padding to the tile grid (e.g. the
    canonical BERT vocab 30522 is padded to a multiple of block_vocab and sliced back).
    compute_dtype: dtype for the two matmuls (operands + h_scratch); None = input dtype.
    Pass jnp.bfloat16 for the native MXU path. Epilogue math is always f32.
    """
    B, S, H = hidden_states.shape
    V = decoder_w.shape[0]
    N = B * S

    out_dtype = hidden_states.dtype
    compute_dtype = jnp.dtype(compute_dtype) if compute_dtype is not None \
        else jnp.dtype(hidden_states.dtype)

    # Clamp/align tile sizes (sublane multiple of 8, lane multiple of 128) and pad.
    # Keep N_pad // block_rows even where possible on v7x so both TCs get equal work.
    block_rows = max(8, min(_round_up(block_rows, 8), _round_up(N, 8)))
    block_vocab = max(128, min(_round_up(block_vocab, 128), _round_up(V, 128)))
    N_pad = _round_up(N, block_rows)
    V_pad = _round_up(V, block_vocab)
    grid = (N_pad // block_rows, V_pad // block_vocab)

    # One-time HBM-side layout prep: flatten rows, K-major (transposed) weights,
    # zero-padding for ragged N / V, cast matmul operands to compute_dtype.
    x2 = hidden_states.reshape(N, H)
    if N_pad != N:
        x2 = jnp.pad(x2, ((0, N_pad - N), (0, 0)))
    x2 = x2.astype(compute_dtype)

    wt_t = transform_w.T.astype(compute_dtype)             # (H_in, H_out)
    wd_t = decoder_w.T                                      # (H, V)
    bv = decoder_bias
    if V_pad != V:
        wd_t = jnp.pad(wd_t, ((0, 0), (0, V_pad - V)))
        bv = jnp.pad(bv, (0, V_pad - V))
    wd_t = wd_t.astype(compute_dtype)

    bt2 = transform_b.reshape(1, H)
    g2 = ln_weight.reshape(1, H)
    beta2 = ln_bias.reshape(1, H)
    bv2 = bv.reshape(1, V_pad)

    # Deeper buffering on the decoder-weight stream: the long transform step at j==0
    # gives the DMA engine slack to run ahead; a 3rd buffer smooths the post-transform
    # bubble. Only when there are enough vocab steps to make use of it.
    n_wd_bufs = 3 if grid[1] >= 3 else 2
    wd_pipe = dict(pipeline_mode=pl.Buffered(3)) if n_wd_bufs == 3 else {}
    const = dict(pipeline_mode=pl.Buffered(1))  # loop-invariant: no double buffer

    # VMEM budget: streamed operands x buffer depth + single-buffered loop-invariant
    # params + scratch + the f32 GELU/LayerNorm intermediates of the j==0 branch.
    c_size = compute_dtype.itemsize
    o_size = jnp.dtype(out_dtype).itemsize
    vmem_need = (
        2 * block_rows * H * c_size                   # x tile (double buffered)
        + H * H * c_size                              # transform weight (single buffered)
        + n_wd_bufs * H * block_vocab * c_size        # decoder weight tiles
        + 2 * block_rows * block_vocab * o_size       # output tile (double buffered)
        + 2 * 8 * block_vocab * 4                     # decoder bias tile (sublane padded)
        + block_rows * H * c_size                     # h_scratch
        + 4 * block_rows * H * 4                      # f32 transform intermediates
        + 8 * 3 * H * 4                               # transform bias / LN params
    )
    # Generation-aware cap: ~96 MiB on the 128 MiB parts (v5e/v6e), ~48 MiB on v7x (64 MiB/TC).
    try:
        vmem_cap = pltpu.get_tpu_info().vmem_capacity_bytes
    except Exception:  # pragma: no cover - conservative fallback (v7x-sized)
        vmem_cap = 64 * 1024 * 1024
    vmem_limit = int(min(max(int(1.5 * vmem_need), 32 * 1024 * 1024),
                         int(0.75 * vmem_cap)))

    kernel = functools.partial(_lm_head_kernel, eps=eps, use_tanh_gelu=use_tanh_gelu)

    out2 = pl.pallas_call(
        kernel,
        out_shape=jax.ShapeDtypeStruct((N_pad, V_pad), out_dtype),
        grid_spec=pltpu.PrefetchScalarGridSpec(
            num_scalar_prefetch=0,
            grid=grid,
            in_specs=[
                pl.BlockSpec((block_rows, H), lambda i, j: (i, 0)),        # x rows
                pl.BlockSpec((H, H), lambda i, j: (0, 0), **const),        # transform W (K-major)
                pl.BlockSpec((1, H), lambda i, j: (0, 0), **const),        # transform b
                pl.BlockSpec((1, H), lambda i, j: (0, 0), **const),        # LN gamma
                pl.BlockSpec((1, H), lambda i, j: (0, 0), **const),        # LN beta
                pl.BlockSpec((H, block_vocab), lambda i, j: (0, j), **wd_pipe),  # decoder W (K-major)
                # TODO(synk): could be made loop-invariant ((0,0) + in-kernel pl.ds slice)
                # to drop one tiny per-step DMA; kept per-tile for lowering robustness.
                pl.BlockSpec((1, block_vocab), lambda i, j: (0, j)),       # decoder bias
            ],
            out_specs=pl.BlockSpec((block_rows, block_vocab), lambda i, j: (i, j)),
            scratch_shapes=[pltpu.VMEM((block_rows, H), compute_dtype)],
        ),
        compiler_params=pltpu.CompilerParams(
            dimension_semantics=("parallel", "arbitrary"),
            vmem_limit_bytes=vmem_limit,
        ),
    )(x2, wt_t, bt2, g2, beta2, wd_t, bv2)

    return out2[:N, :V].reshape(B, S, V)


def _reference(hidden_states, transform_w, transform_b, ln_weight, ln_bias,
               decoder_w, decoder_bias, eps=1e-12):
    h = hidden_states @ transform_w.T + transform_b
    h = h * 0.5 * (1.0 + jax.scipy.special.erf(h / jnp.sqrt(2.0)))
    u = h.mean(-1, keepdims=True)
    s = ((h - u) ** 2).mean(-1, keepdims=True)
    hn = (h - u) / jnp.sqrt(s + eps)
    hn = ln_weight * hn + ln_bias
    return hn @ decoder_w.T + decoder_bias


if __name__ == "__main__":
    # Small shapes chosen to exercise both row padding (N = 14 -> 16) and vocab
    # padding (V = 250 -> 256), mirroring the real-model case (30522 -> 30720).
    B, S, H, V = 2, 7, 32, 250
    eps = 1e-12

    key = jax.random.PRNGKey(0)
    k1, k2, k3, k4, k5, k6, k7 = jax.random.split(key, 7)

    hidden_states = jax.random.normal(k1, (B, S, H), dtype=jnp.float32)
    transform_w = jax.random.normal(k2, (H, H), dtype=jnp.float32) * 0.02
    transform_b = jax.random.normal(k3, (H,), dtype=jnp.float32) * 0.02
    ln_weight = 1.0 + 0.1 * jax.random.normal(k4, (H,), dtype=jnp.float32)
    ln_bias = 0.1 * jax.random.normal(k5, (H,), dtype=jnp.float32)
    decoder_w = jax.random.normal(k6, (V, H), dtype=jnp.float32) * 0.02
    decoder_bias = jax.random.normal(k7, (V,), dtype=jnp.float32) * 0.02

    out = bert_lm_prediction_head(
        hidden_states, transform_w, transform_b, ln_weight, ln_bias,
        decoder_w, decoder_bias, eps=eps, block_rows=8, block_vocab=128)
    out = jax.block_until_ready(out)

    ref = _reference(hidden_states, transform_w, transform_b, ln_weight,
                     ln_bias, decoder_w, decoder_bias, eps=eps)

    assert out.shape == (B, S, V)
    assert jnp.allclose(out, ref, atol=1e-4, rtol=1e-4), "mismatch vs reference"
    print("KERNEL_OK")
</pallas_src>

<mosaic_0001>
module attributes {stable_mosaic.version = 11 : i64} {
  func.func @_lm_head_kernel(%arg0: i32, %arg1: i32, %arg2: memref<8x32xf32, #tpu.memory_space<vmem>>, %arg3: memref<32x32xf32, #tpu.memory_space<vmem>>, %arg4: memref<1x32xf32, #tpu.memory_space<vmem>>, %arg5: memref<1x32xf32, #tpu.memory_space<vmem>>, %arg6: memref<1x32xf32, #tpu.memory_space<vmem>>, %arg7: memref<32x128xf32, #tpu.memory_space<vmem>>, %arg8: memref<1x128xf32, #tpu.memory_space<vmem>>, %arg9: memref<8x128xf32, #tpu.memory_space<vmem>>, %arg10: memref<8x32xf32, #tpu.memory_space<vmem>>) attributes {dimension_semantics = [#tpu.dimension_semantics<parallel>, #tpu.dimension_semantics<arbitrary>], iteration_bounds = array<i64: 2, 2>, scalar_prefetch = 0 : i64, scratch_operands = 1 : i64, tpu.core_type = #tpu.core_type<tc>, window_params = [{transform_indices = @transform_0, window_bounds = array<i64: 8, 32>}, {pipeline_mode = #tpu.pipeline_mode<synchronous>, transform_indices = @transform_1, window_bounds = array<i64: 32, 32>}, {pipeline_mode = #tpu.pipeline_mode<synchronous>, transform_indices = @transform_2, window_bounds = array<i64: 1, 32>}, {pipeline_mode = #tpu.pipeline_mode<synchronous>, transform_indices = @transform_3, window_bounds = array<i64: 1, 32>}, {pipeline_mode = #tpu.pipeline_mode<synchronous>, transform_indices = @transform_4, window_bounds = array<i64: 1, 32>}, {transform_indices = @transform_5, window_bounds = array<i64: 32, 128>}, {transform_indices = @transform_6, window_bounds = array<i64: 1, 128>}, {transform_indices = @transform_7, window_bounds = array<i64: 8, 128>}]} {
    %c0_i32 = arith.constant 0 : i32
    %0 = arith.cmpi eq, %arg1, %c0_i32 : i32
    %1 = arith.extui %0 : i1 to i32
    %c0_i32_0 = arith.constant 0 : i32
    %2 = arith.cmpi ne, %1, %c0_i32_0 : i32
    scf.if %2 {
      %c0_8 = arith.constant 0 : index
      %c0_9 = arith.constant 0 : index
      %10 = vector.load %arg2[%c0_8, %c0_9] : memref<8x32xf32, #tpu.memory_space<vmem>>, vector<8x32xf32>
      %c0_10 = arith.constant 0 : index
      %c0_11 = arith.constant 0 : index
      %11 = vector.load %arg3[%c0_10, %c0_11] : memref<32x32xf32, #tpu.memory_space<vmem>>, vector<32x32xf32>
      %cst_12 = arith.constant dense<0.000000e+00> : vector<8x32xf32>
      %12 = tpu.matmul %10, %11, %cst_12 {dimension_numbers = #tpu.dot_dimension_numbers<[1], [0], [0], [1], [0, 0, 1, 1], [], []>} : vector<8x32xf32>, vector<32x32xf32>, vector<8x32xf32> -> vector<8x32xf32>
      %c0_13 = arith.constant 0 : index
      %c0_14 = arith.constant 0 : index
      %13 = vector.load %arg4[%c0_13, %c0_14] : memref<1x32xf32, #tpu.memory_space<vmem>>, vector<1x32xf32>
      %14 = vector.broadcast %13 : vector<1x32xf32> to vector<8x32xf32>
      %15 = arith.addf %12, %14 : vector<8x32xf32>
      %cst_15 = arith.constant 0.707106769 : f32
      %16 = vector.broadcast %cst_15 : f32 to vector<8x32xf32>
      %17 = arith.mulf %15, %16 : vector<8x32xf32>
      %18 = math.absf %17 : vector<8x32xf32>
      %cst_16 = arith.constant 0.327591091 : f32
      %19 = vector.broadcast %cst_16 : f32 to vector<8x32xf32>
      %20 = arith.mulf %19, %18 : vector<8x32xf32>
      %cst_17 = arith.constant 1.000000e+00 : f32
      %21 = vector.broadcast %cst_17 : f32 to vector<8x32xf32>
      %22 = arith.addf %21, %20 : vector<8x32xf32>
      %cst_18 = arith.constant 1.000000e+00 : f32
      %23 = vector.broadcast %cst_18 : f32 to vector<8x32xf32>
      %24 = arith.divf %23, %22 : vector<8x32xf32>
      %cst_19 = arith.constant 1.06140542 : f32
      %25 = vector.broadcast %cst_19 : f32 to vector<8x32xf32>
      %26 = arith.mulf %25, %24 : vector<8x32xf32>
      %cst_20 = arith.constant 1.45315206 : f32
      %27 = vector.broadcast %cst_20 : f32 to vector<8x32xf32>
      %28 = arith.subf %26, %27 : vector<8x32xf32>
      %29 = arith.mulf %28, %24 : vector<8x32xf32>
      %cst_21 = arith.constant 1.42141378 : f32
      %30 = vector.broadcast %cst_21 : f32 to vector<8x32xf32>
      %31 = arith.addf %29, %30 : vector<8x32xf32>
      %32 = arith.mulf %31, %24 : vector<8x32xf32>
      %cst_22 = arith.constant 0.284496725 : f32
      %33 = vector.broadcast %cst_22 : f32 to vector<8x32xf32>
      %34 = arith.subf %32, %33 : vector<8x32xf32>
      %35 = arith.mulf %34, %24 : vector<8x32xf32>
      %cst_23 = arith.constant 0.254829586 : f32
      %36 = vector.broadcast %cst_23 : f32 to vector<8x32xf32>
      %37 = arith.addf %35, %36 : vector<8x32xf32>
      %38 = arith.mulf %37, %24 : vector<8x32xf32>
      %cst_24 = arith.constant 0.000000e+00 : f32
      %39 = vector.broadcast %cst_24 : f32 to vector<8x32xf32>
      %40 = arith.subf %39, %18 : vector<8x32xf32>
      %41 = arith.mulf %40, %18 : vector<8x32xf32>
      %42 = math.exp %41 : vector<8x32xf32>
      %43 = arith.mulf %38, %42 : vector<8x32xf32>
      %cst_25 = arith.constant 1.000000e+00 : f32
      %44 = vector.broadcast %cst_25 : f32 to vector<8x32xf32>
      %45 = arith.subf %44, %43 : vector<8x32xf32>
      %cst_26 = arith.constant 0.000000e+00 : f32
      %46 = vector.broadcast %cst_26 : f32 to vector<8x32xf32>
      %47 = arith.cmpf oge, %17, %46 : vector<8x32xf32>
      %cst_27 = arith.constant 0.000000e+00 : f32
      %48 = vector.broadcast %cst_27 : f32 to vector<8x32xf32>
      %49 = arith.subf %48, %45 : vector<8x32xf32>
      %50 = arith.select %47, %45, %49 : vector<8x32xi1>, vector<8x32xf32>
      %cst_28 = arith.constant 5.000000e-01 : f32
      %51 = vector.broadcast %cst_28 : f32 to vector<8x32xf32>
      %52 = arith.mulf %15, %51 : vector<8x32xf32>
      %cst_29 = arith.constant 1.000000e+00 : f32
      %53 = vector.broadcast %cst_29 : f32 to vector<8x32xf32>
      %54 = arith.addf %53, %50 : vector<8x32xf32>
      %55 = arith.mulf %52, %54 : vector<8x32xf32>
      %cst_30 = arith.constant dense<0.000000e+00> : vector<8xf32>
      %56 = vector.multi_reduction <add>, %55, %cst_30 [1] : vector<8x32xf32> to vector<8xf32>
      %57 = vector.shape_cast %56 : vector<8xf32> to vector<8x1xf32>
      %cst_31 = arith.constant 3.200000e+01 : f32
      %58 = vector.broadcast %cst_31 : f32 to vector<8x1xf32>
      %59 = arith.divf %57, %58 : vector<8x1xf32>
      %60 = vector.broadcast %59 : vector<8x1xf32> to vector<8x32xf32>
      %61 = arith.subf %55, %60 : vector<8x32xf32>
      %62 = arith.mulf %61, %61 : vector<8x32xf32>
      %cst_32 = arith.constant dense<0.000000e+00> : vector<8xf32>
      %63 = vector.multi_reduction <add>, %62, %cst_32 [1] : vector<8x32xf32> to vector<8xf32>
      %64 = vector.shape_cast %63 : vector<8xf32> to vector<8x1xf32>
      %cst_33 = arith.constant 3.200000e+01 : f32
      %65 = vector.broadcast %cst_33 : f32 to vector<8x1xf32>
      %66 = arith.divf %64, %65 : vector<8x1xf32>
      %cst_34 = arith.constant 9.99999996E-13 : f32
      %67 = vector.broadcast %cst_34 : f32 to vector<8x1xf32>
      %68 = arith.addf %66, %67 : vector<8x1xf32>
      %69 = math.rsqrt %68 : vector<8x1xf32>
      %70 = vector.broadcast %69 : vector<8x1xf32> to vector<8x32xf32>
      %71 = arith.mulf %61, %70 : vector<8x32xf32>
      %c0_35 = arith.constant 0 : index
      %c0_36 = arith.constant 0 : index
      %72 = vector.load %arg5[%c0_35, %c0_36] : memref<1x32xf32, #tpu.memory_space<vmem>>, vector<1x32xf32>
      %73 = vector.broadcast %72 : vector<1x32xf32> to vector<8x32xf32>
      %74 = arith.mulf %73, %71 : vector<8x32xf32>
      %c0_37 = arith.constant 0 : index
      %c0_38 = arith.constant 0 : index
      %75 = vector.load %arg6[%c0_37, %c0_38] : memref<1x32xf32, #tpu.memory_space<vmem>>, vector<1x32xf32>
      %76 = vector.broadcast %75 : vector<1x32xf32> to vector<8x32xf32>
      %77 = arith.addf %74, %76 : vector<8x32xf32>
      %c0_39 = arith.constant 0 : index
      %c0_40 = arith.constant 0 : index
      %78 = vector.load %arg10[%c0_39, %c0_40] : memref<8x32xf32, #tpu.memory_space<vmem>>, vector<8x32xf32>
      tpu.vector_store %arg10[%c0_39, %c0_40], %77 {strides = array<i32>} : memref<8x32xf32, #tpu.memory_space<vmem>>, vector<8x32xf32>,
    } else {
    }
    %c0 = arith.constant 0 : index
    %c0_1 = arith.constant 0 : index
    %3 = vector.load %arg10[%c0, %c0_1] : memref<8x32xf32, #tpu.memory_space<vmem>>, vector<8x32xf32>
    %c0_2 = arith.constant 0 : index
    %c0_3 = arith.constant 0 : index
    %4 = vector.load %arg7[%c0_2, %c0_3] : memref<32x128xf32, #tpu.memory_space<vmem>>, vector<32x128xf32>
    %cst = arith.constant dense<0.000000e+00> : vector<8x128xf32>
    %5 = tpu.matmul %3, %4, %cst {dimension_numbers = #tpu.dot_dimension_numbers<[1], [0], [0], [1], [0, 0, 1, 1], [], []>} : vector<8x32xf32>, vector<32x128xf32>, vector<8x128xf32> -> vector<8x128xf32>
    %c0_4 = arith.constant 0 : index
    %c0_5 = arith.constant 0 : index
    %6 = vector.load %arg8[%c0_4, %c0_5] : memref<1x128xf32, #tpu.memory_space<vmem>>, vector<1x128xf32>
    %7 = vector.broadcast %6 : vector<1x128xf32> to vector<8x128xf32>
    %8 = arith.addf %5, %7 : vector<8x128xf32>
    %c0_6 = arith.constant 0 : index
    %c0_7 = arith.constant 0 : index
    %9 = vector.load %arg9[%c0_6, %c0_7] : memref<8x128xf32, #tpu.memory_space<vmem>>, vector<8x128xf32>
    tpu.vector_store %arg9[%c0_6, %c0_7], %8 {strides = array<i32>} : memref<8x128xf32, #tpu.memory_space<vmem>>, vector<8x128xf32>,
    return
  }
  func.func @transform_0(%arg0: i32, %arg1: i32) -> (i32, i32) {
    %c0_i32 = arith.constant 0 : i32
    %c0_i32_0 = arith.constant 0 : i32
    return %arg0, %c0_i32 : i32, i32
  }
  func.func @transform_1(%arg0: i32, %arg1: i32) -> (i32, i32) {
    %c0_i32 = arith.constant 0 : i32
    %c0_i32_0 = arith.constant 0 : i32
    %c0_i32_1 = arith.constant 0 : i32
    return %c0_i32, %c0_i32_0 : i32, i32
  }
  func.func @transform_2(%arg0: i32, %arg1: i32) -> (i32, i32) {
    %c0_i32 = arith.constant 0 : i32
    %c0_i32_0 = arith.constant 0 : i32
    %c0_i32_1 = arith.constant 0 : i32
    return %c0_i32, %c0_i32_0 : i32, i32
  }
  func.func @transform_3(%arg0: i32, %arg1: i32) -> (i32, i32) {
    %c0_i32 = arith.constant 0 : i32
    %c0_i32_0 = arith.constant 0 : i32
    %c0_i32_1 = arith.constant 0 : i32
    return %c0_i32, %c0_i32_0 : i32, i32
  }
  func.func @transform_4(%arg0: i32, %arg1: i32) -> (i32, i32) {
    %c0_i32 = arith.constant 0 : i32
    %c0_i32_0 = arith.constant 0 : i32
    %c0_i32_1 = arith.constant 0 : i32
    return %c0_i32, %c0_i32_0 : i32, i32
  }
  func.func @transform_5(%arg0: i32, %arg1: i32) -> (i32, i32) {
    %c0_i32 = arith.constant 0 : i32
    %c0_i32_0 = arith.constant 0 : i32
    return %c0_i32, %arg1 : i32, i32
  }
  func.func @transform_6(%arg0: i32, %arg1: i32) -> (i32, i32) {
    %c0_i32 = arith.constant 0 : i32
    %c0_i32_0 = arith.constant 0 : i32
    return %c0_i32, %arg1 : i32, i32
  }
  func.func @transform_7(%arg0: i32, %arg1: i32) -> (i32, i32) {
    %c0_i32 = arith.constant 0 : i32
    return %arg0, %arg1 : i32, i32
  }
}

</mosaic_0001>

<bundles_post_ra>
// kernel: tpu_custom_call.1
= control target key start
LH: loop header
LB: loop body
LE: loop exit
PB: predicated region body
PF: predicated region fallthrough
CT: control target
= control target key end

     0   :  { %s1699_s0 = inlined_call_operand.hbm [shape: f32[16,32], index: 0, kind: input, shape index: {}]   ;;  %s1700_s1 = inlined_call_operand.hbm [shape: f32[32,32], index: 1, kind: input, shape index: {}]   ;;  %s1701_s2 = inlined_call_operand.vmem [shape: f32[1,32], index: 2, kind: input, shape index: {}]   ;;  %s1702_s3 = inlined_call_operand.vmem [shape: f32[1,32], index: 3, kind: input, shape index: {}]   ;;  %s1703_s4 = inlined_call_operand.vmem [shape: f32[1,32], index: 4, kind: input, shape index: {}]   ;;  %s1704_s5 = inlined_call_operand.hbm [shape: f32[32,256], index: 5, kind: input, shape index: {}]   ;;  %s1705_s6 = inlined_call_operand.vmem [shape: f32[1,256], index: 6, kind: input, shape index: {}]   ;;  %s1706_s7 = inlined_call_operand.hbm [shape: f32[16,256], index: 7, kind: output, shape index: {}]  }
   0x1   :  { %1722 = sst [smem:[#allocation26_spill]] %s1699_s0 }
   0x2   :  { %1723 = sst [smem:[#allocation27_spill]] %s1701_s2 }
   0x3   :  { %1724 = sst [smem:[#allocation28_spill]] %s1702_s3 }
   0x4   :  { %1725 = sst [smem:[#allocation29_spill]] %s1703_s4 }
   0x5   :  { %1726 = sst [smem:[#allocation30_spill]] %s1705_s6 }
   0x6   :  { %1727 = sst [smem:[#allocation31_spill]] %s1706_s7 }
   0x7   :  { %12 = vsyncpa [#allocation4], 0 }
   0x8   :  { %14 = vsyncpa [#allocation4 + $0x1], 0 }
   0x9   :  { %15 = vsyncpa [#allocation7], 0 }
   0xa   :  { %16 = vsyncpa [#allocation5], 0 }
   0xb   :  { %18 = vsyncpa [#allocation5 + $0x1], 0  ;;  %s1272_s24 = smov 0   ;;  %s1274_s25 = smov 0  }
   0xc   :  { %s1276_s26 = smov 0   ;;  %s1278_s27 = smov 0  }
   0xd   :  { %s1280_s28 = smov 0   ;;  %s1282_s29 = smov 0  }
   0xe   :  { %s1284_s30 = smov 0   ;;  %s1286_s8 = smov 0  }
   0xf   :  { %s1288_s9 = smov 0   ;;  %s1290_s10 = smov 0  }
  0x10   :  { %s1292_s11 = smov 0   ;;  %s1294_s12 = smov 0  }
  0x11   :  { %s1296_s13 = smov 0   ;;  %s1298_s14 = smov 0  }
  0x12 LB: > { %1728 = sst [smem:[#allocation14_spill]] %s1173_s26  ;;  %s33_s15 = sadd.s32 1, %s1209_s12  ;;  %s1217_s14 = sphi %s1298_s14, %s24_s14   ;;  %s1213_s13 = sphi %s1296_s13, %s1781_s13   ;;  %s1209_s12 = sphi %s1294_s12, %s1780_s12   ;;  %s1205_s11 = sphi %s1292_s11, %s1779_s11   ;;  %s1201_s10 = sphi %s1290_s10, %s1778_s10   ;;  %s1197_s9 = sphi %s1288_s9, %s1777_s9   ;;  %s1193_s8 = sphi %s1286_s8, %s1787_s8   ;;  %s1189_s30 = sphi %s1284_s30, %s1786_s30   ;;  %s1185_s29 = sphi %s1282_s29, %s1775_s29   ;;  %s1181_s28 = sphi %s1280_s28, %s1785_s28   ;;  %s1177_s27 = sphi %s1278_s27, %s1784_s27   ;;  %s1173_s26 = sphi %s1276_s26, %s1773_s26   ;;  %s1169_s25 = sphi %s1274_s25, %s1783_s25   ;;  %s1165_s24 = sphi %s1272_s24, %s1782_s24  }
  0x13   : > { %1729 = sst [smem:[#allocation15_spill]] %s1185_s29  ;;  %s36_s16 = sadd.s32 1, %s1213_s13 }
  0x14   : > { %1730 = sst [smem:[#allocation16_spill]] %s1197_s9  ;;  %p34_p0 = scmp.ge.s32.totalorder %s33_s15, 2 }
  0x15   : > { %1731 = sst [smem:[#allocation17_spill]] %s1201_s10  ;;  %s43_s17 = sadd.s32 1, %s1197_s9 }
  0x16   : > { %1732 = sst [smem:[#allocation18_spill]] %s1205_s11  ;;  %p50_p1 = scmp.ne.s32.totalorder %s1197_s9, %s1193_s8 }
  0x17   : > { %1733 = sst [smem:[#allocation19_spill]] %s1209_s12  ;;  %p51_p2 = scmp.eq.s32.totalorder %s1217_s14, 0 }
  0x18   : > { %1734 = sst [smem:[#allocation20_spill]] %s1213_s13  ;;  %s1789_s15 = smov (%p34_p0, %s33_s15), 0 }
  0x19   : > { %1735 = sst [smem:[#allocation21_spill]] %s1789_s15  ;;  %s1791_s16 = smov (!%p34_p0, %s36_s16), %s1213_s13 }
  0x1a   : > { %p1353_p3 = por %p51_p2, %p50_p1  ;;  %p38_p5 = scmp.ge.s32.totalorder %s1791_s16, 2 }
  0x1b   : > { %s150_s19 = ssub.s32 %s1209_s12, %s1789_s15  ;;  %s153_s20 = sadd.s32 1, %s1185_s29 }
  0x1c   : > { %p151_p6 = scmp.eq.s32.totalorder %s150_s19, 0  ;;  %s1793_s16 = smov (%p38_p5, %s1791_s16), 0 }
  0x1d   : > { %1737 = sst [smem:[#allocation22_spill]] %s1793_s16  ;;  %s40_s22 = ssub.s32 %s1213_s13, %s1793_s16 }
  0x1e   : > { %s1365_s21 = scalar_select %p151_p6, %s1185_s29, %s153_s20  }
  0x1f   : > { %p160_p7 = scmp.ne.s32.totalorder %s1185_s29, %s1181_s28  ;;  %p41_p8 = scmp.eq.s32.totalorder %s40_s22, 0 }
  0x20   : > { %1738 = sst [smem:[#allocation23_spill]] %s1365_s21  ;;  %s204_s15 = sor.u32 %s150_s19, %s40_s22 }
  0x21   : > { %p1375_p10 = por %p160_p7, %p51_p2  ;;  %p205_p11 = scmp.eq.s32.totalorder %s204_s15, 0 }
  0x22   : > { %s1380_s7 = scalar_select %p41_p8, %s1197_s9, %s43_s17  }
  0x23   : > { %s207_s11 = sadd.s32 1, %s1173_s26  ;;  %p844_p12 = scmp.lt.s32.totalorder %s1217_s14, 4 }
  0x24   : > { %1740 = sst [smem:[#allocation24_spill]] %s1380_s7  ;;  %s266_s20 = sand.u32 1, %s1217_s14  }
  0x25   : > { %s1385_s4 = scalar_select %p205_p11, %s1173_s26, %s207_s11  }
  0x26   : > { %s268_s16 = sand.u32 1, %s1197_s9   ;;  %s752_s3 = sshll.u32 %s1213_s13, 7 }
  0x27   : > { %1741 = sst [smem:[#allocation25_spill]] %s1385_s4  ;;  %s751_s21 = sshll.u32 %s268_s16, 3 }
  0x28   : > { %s1742_s0 = sld [smem:[#allocation26_spill]]  ;;  %s270_s17 = scalar_lea.vmem [#allocation3], %s751_s21 }
  0x29   : > { %s277_s19 = sshll.u32 %s270_s17, 4  ;;  %p1399_p13 = pnand %p844_p12, %p1353_p3  ;;  %s1395_s19 = int_to_ptr.vmem [resolvable:$true] %s277_s19 }
  0x2a   : > { %p1405_p0 = pnand %p844_p12, %p1375_p10 }
  0x2b   : > { %p977_p2 = pneg %p1399_p13 }
  0x2c   : > { %s1744_s2 = scalar_select %p1405_p0, 1, 0 }
  0x2e   : > { %s1393_s10 = scalar_lea.hbm %s1742_s0, %s752_s3  ;;  %s1409_s3 = scalar_lea.sflag [#allocation4], %s266_s20 }
  0x2f   : > { %s975_s6 = scalar_lea.hbm %s1393_s10, 128  ;;  %s980_s18 = scalar_lea.hbm %s1742_s0, 256 }
  0x30   : > { %p976_p1 = scmp.ne.s32.totalorder %s1393_s10, %s975_s6  ;;  %p981_p6 = scmp.lt.u32.totalorder %s1393_s10, %s1742_s0 }
  0x31   : > { %p982_p7 = scmp.lt.u32.totalorder %s980_s18, %s975_s6  ;;  %p984_p10 = scmp.lt.u32.totalorder %s975_s6, %s1393_s10 }
  0x32   : > { %p978_p5 = pnand %p977_p2, %p976_p1 }
  0x33   : > { %p983_p8 = por %p982_p7, %p981_p6 }
  0x34   : > { %p979_p3 = pneg %p978_p5 }
  0x35   : > { %p985_p11 = por %p984_p10, %p983_p8 }
  0x37   : > { %p986_p12 = pnand %p985_p11, %p979_p3 }
  0x39   : > { %989 = shalt.err (!%p986_p12)
}
  0x3a   : > { %s990_s23 = scalar_lea.vmem %s1395_s19, 128  ;;  %s1219_s20 = smov [#allocation3]  }
  0x3b   : > { %p991_p1 = scmp.ne.s32.totalorder %s1395_s19, %s990_s23  ;;  %s995_s17 = sshll.u32 %s1219_s20, 4  ;;  %s996_s17 = int_to_ptr.vmem [resolvable:$false] %s995_s17 }
  0x3c   : > { %s997_s15 = scalar_lea.vmem %s996_s17, 256  ;;  %p998_p4 = scmp.lt.s32.totalorder %s1395_s19, %s996_s17 }
  0x3d   : > { %p993_p5 = pnand %p991_p1, %p977_p2  ;;  %p999_p6 = scmp.lt.s32.totalorder %s997_s15, %s990_s23 }
  0x3f   : > { %p994_p9 = pneg %p993_p5  ;;  %p1000_p7 = por %p999_p6, %p998_p4 }
  0x41   : > { %p1001_p8 = pnand %p1000_p7, %p994_p9 }
  0x43   : > { %1004 = shalt.err (!%p1001_p8)
}
  0x44   : > { %835 = dma.hbm_to_vmem [thread:$0]  (!%p1399_p13), %s1393_s10, 128, %s1395_s19, %s1409_s3  }
  0x45   : > { %s1438_s6 = sadd.s32 4294967295, %s1217_s14   ;;  %s747_s11 = sadd.s32 4294967294, %s1217_s14  }
  0x46   : > { %p1716_p4 = scmp.eq.s32.totalorder %s1438_s6, 0  ;;  %p217_p9 = scmp.ne.s32.totalorder %s1173_s26, %s1169_s25 }
  0x47   : > { %p218_p2 = scmp.eq.s32.totalorder %s1438_s6, 3  ;;  %p1745_p3 = scmp.ne.s32.totalorder %s1193_s8, %s1189_s30 }
  0x48   : > { %p1747_p13 = scmp.ne.s32.totalorder %s1181_s28, %s1177_s27  ;;  %p223_p1 = scmp.ne.s32.totalorder %s1169_s25, %s1165_s24 }
  0x49   : > { %p1450_p10 = por %p1716_p4, %p1745_p3  ;;  %p1463_p12 = por %p218_p2, %p217_p9 }
  0x4a   : > { %p1459_p11 = por %p1747_p13, %p1716_p4  ;;  %p224_p5 = scmp.eq.s32.totalorder %s747_s11, 3 }
  0x4b   : > { %s1746_s16 = scalar_select %p1450_p10, 1, 0 }
  0x4c   : > { %s1748_s10 = scalar_select %p1459_p11, 1, 0 }
  0x4d   : > { %s1749_s19 = scalar_select %p1463_p12, 1, 0 }
  0x4e   : > { %p748_p6 = scmp.ge.s32.totalorder %s1217_s14, 1  ;;  %p231_p7 = scmp.lt.s32.totalorder %s1217_s14, 5 }
  0x4f   : > { %p1471_p8 = por %p224_p5, %p223_p1  ;;  %s1220_s27 = smov [#allocation6]  }
  0x50   : > { %p1475_p3 = pnand %p748_p6, %p231_p7  ;;  %s243_s21 = sshll.u32 %s1220_s27, 4  ;;  %s1479_s21 = int_to_ptr.vmem [resolvable:$true] %s243_s21 }
  0x51   : > { %s1750_s30 = scalar_select %p1471_p8, 1, 0 }
  0x52   : > { %s1751_s18 = scalar_select %p1475_p3, 1, 0 }
  0x53   : > { %p828_p9 = pneg %p1475_p3  ;;  %s286_s22 = sand.u32 1, %s1185_s29  }
  0x54   : > { %s754_s23 = sshll.u32 %s1209_s12, 7  ;;  %s753_s17 = sshll.u32 %s286_s22, 5 }
  0x55   : > { %p1487_p2 = pnand %p828_p9, %p1716_p4  ;;  %s1494_s0 = scalar_lea.hbm %s1704_s5, %s754_s23 }
  0x56   : > { %s288_s13 = scalar_lea.vmem [#allocation8], %s753_s17  ;;  %s1005_s4 = scalar_lea.hbm %s1700_s1, 512 }
  0x57   : > { %s294_s27 = sshll.u32 %s288_s13, 4  ;;  %p1006_p13 = scmp.ne.s32.totalorder %s1700_s1, %s1005_s4  ;;  %s1520_s27 = int_to_ptr.vmem [resolvable:$true] %s294_s27 }
  0x58   : > { %p1007_p1 = pneg %p1487_p2  ;;  %p1012_p7 = scmp.lt.u32.totalorder %s1005_s4, %s1700_s1 }
  0x5a   : > { %p1008_p5 = pnand %p1007_p1, %p1006_p13 }
  0x5c   : > { %p1009_p6 = pneg %p1008_p5 }
  0x5e   : > { %p1014_p9 = pnand %p1012_p7, %p1009_p6 }
  0x60   : > { %1017 = shalt.err (!%p1014_p9)
}
  0x61   : > { %s1018_s13 = scalar_lea.vmem %s1479_s21, 512  ;;  %p1026_p11 = scmp.lt.s32.totalorder %s1479_s21, %s1479_s21 }
  0x62   : > { %p1019_p4 = scmp.ne.s32.totalorder %s1479_s21, %s1018_s13  ;;  %p1027_p10 = scmp.lt.s32.totalorder %s1018_s13, %s1018_s13 }
  0x64   : > { %p1021_p8 = pnand %p1019_p4, %p1007_p1  ;;  %p1028_p3 = por %p1027_p10, %p1026_p11 }
  0x66   : > { %p1022_p12 = pneg %p1021_p8 }
  0x68   : > { %p1029_p0 = pnand %p1028_p3, %p1022_p12 }
  0x6a   : > { %1032 = shalt.err (!%p1029_p0)
}
  0x6b   : > { %s1221_s7 = smov 128   ;;  %s1222_s4 = smov 8  }
  0x6c   : > { %831 = dma.hbm_to_vmem [thread:$0]  (!%p1487_p2), %s1700_s1, 512, %s1479_s21, [#allocation7], %s1221_s7, %s1221_s7, %s1222_s4  }
  0x6d   : > { %s1033_s9 = scalar_lea.hbm %s1494_s0, 512  ;;  %p1753_p4 = scmp.ne.s32.totalorder %s1744_s2, 0 }
  0x6e   : > { %p1034_p0 = scmp.ne.s32.totalorder %s1494_s0, %s1033_s9  ;;  %s1038_s20 = scalar_lea.hbm %s1704_s5, 1024 }
  0x6f   : > { %p1035_p10 = pneg %p1753_p4  ;;  %p1039_p8 = scmp.lt.u32.totalorder %s1494_s0, %s1704_s5 }
  0x70   : > { %p1040_p3 = scmp.lt.u32.totalorder %s1038_s20, %s1033_s9  ;;  %p1042_p13 = scmp.lt.u32.totalorder %s1033_s9, %s1494_s0 }
  0x71   : > { %p1036_p11 = pnand %p1035_p10, %p1034_p0 }
  0x72   : > { %p1041_p2 = por %p1040_p3, %p1039_p8 }
  0x73   : > { %p1037_p12 = pneg %p1036_p11 }
  0x74   : > { %p1043_p1 = por %p1042_p13, %p1041_p2 }
  0x76   : > { %p1044_p5 = pnand %p1043_p1, %p1037_p12 }
  0x78   : > { %1047 = shalt.err (!%p1044_p5)
}
  0x79   : > { %s1048_s21 = scalar_lea.vmem %s1520_s27, 512  ;;  %s1223_s11 = smov [#allocation8]  }
  0x7a   : > { %p1049_p6 = scmp.ne.s32.totalorder %s1520_s27, %s1048_s21  ;;  %s1053_s22 = sshll.u32 %s1223_s11, 4  ;;  %s1054_s22 = int_to_ptr.vmem [resolvable:$false] %s1053_s22 }
  0x7b   : > { %s1055_s13 = scalar_lea.vmem %s1054_s22, 1024  ;;  %p1056_p0 = scmp.lt.s32.totalorder %s1520_s27, %s1054_s22 }
  0x7c   : > { %p1051_p7 = pnand %p1049_p6, %p1035_p10  ;;  %p1057_p11 = scmp.lt.s32.totalorder %s1055_s13, %s1048_s21 }
  0x7e   : > { %p1052_p9 = pneg %p1051_p7  ;;  %p1058_p8 = por %p1057_p11, %p1056_p0 }
  0x80   : > { %p1059_p3 = pnand %p1058_p8, %p1052_p9 }
  0x82   : > { %1062 = shalt.err (!%p1059_p3)
}
  0x83   : > { %s1224_s26 = smov 256   ;;  %p1754_p10 = scmp.ne.s32.totalorder %s1751_s18, 0 }
  0x84   : > { %838 = dma.hbm_to_vmem [thread:$0]  (!%p1753_p4), %s1494_s0, 512, %s1520_s27, %s1409_s3, %s1224_s26, %s1221_s7, %s1222_s4  }
  0x85   : > { %312 = sbr.rel (%p1754_p10) target bundleno = 980 (0x3d4), region = 48  ;;  %s314_s29 = sand.u32 (!%p1754_p10), 1, %s1438_s6  }
  0x86   : > { %s316_s9 = sand.u32 (!%p1754_p10), 1, %s1193_s8   ;;  %s315_s23 = scalar_lea.sflag (!%p1754_p10), [#allocation4], %s314_s29 }
  0x87   : > { %s1554_s12 = sshll.u32 (!%p1754_p10), %s316_s9, 3  ;;  %p1755_p12 = scmp.ne.s32.totalorder (!%p1754_p10), %s1746_s16, 0 }
  0x88   : > { %s318_s20 = scalar_lea.vmem (!%p1754_p10), [#allocation3], %s1554_s12 }
  0x8c   : > { %1148 = dma.done.wait (%p1755_p12), %s315_s23, 128  }
  0x8d   : > { %1150 = vsyncadd (%p1755_p12), %s315_s23, 4294967168  ;;  %p1756_p4 = scmp.eq.s32.totalorder %s1438_s6, 0 }
  0x8f   : > { %1152 = dma.done.wait (%p1756_p4), [#allocation7], 512   ;;  %p1757_p2 = pmov %p1756_p4 }
  0x90   : > { %s329_s0 = sand.u32 1, %s1181_s28   ;;  %p1758_p13 = scmp.ne.s32.totalorder %s1748_s10, 0 }
  0x91   : > { %1154 = vsyncadd (%p1757_p2), [#allocation7], 4294966784  ;;  %s758_s2 = sshll.u32 %s329_s0, 5 }
  0x92   : > { %s1566_s3 = scalar_lea.vmem [#allocation8], %s758_s2 }
  0x93   : > { %1156 = dma.done.wait (%p1758_p13), %s315_s23, 512  }
  0x94   : > { %1158 = vsyncadd (%p1758_p13), %s315_s23, 4294966784  ;;  %s1759_s16 = sld [smem:[#allocation17_spill]]  ;;  %s367_s18 = sand.u32 1, %s1169_s25  }
  0x95   : > { %s1576_s6 = sshll.u32 %s367_s18, 3  ;;  %s1760_s17 = sld [smem:[#allocation30_spill]] }
  0x96   : > { %s369_s21 = scalar_lea.vmem [#allocation9], %s1576_s6 }
  0x9a   : > { %p370_p1 = scmp.lt.s32.totalorder %s1759_s16, 1  ;;  %p760_p5 = scmp.ne.s32.totalorder %s1759_s16, 0 }
  0x9b   : > { %v378_v0 = vld [vmem:[#allocation6] sm:$0xff] (!%p760_p5)  ;;  %v379_v1 = vld [vmem:[#allocation6 + $0x8] sm:$0xff] (!%p760_p5)  ;;  %v380_v2 = vld [vmem:[#allocation6 + $0x10] sm:$0xff] (!%p760_p5)  ;;  %v1225_v3 = vmov (!%p760_p5), 0.0|0.0   ;;  %vm1226_vm0 = vmmov (!%p760_p5), 0   ;;  %v1227_v6 = vmov (!%p760_p5), 0.0  }
  0x9c   : > { %s1579_s27 = scalar_select %p370_p1, %s1759_s16, 1 }
  0x9d   : > { %376 = sbr.rel (%p760_p5) target bundleno = 742 (0x2e6), region = 64  ;;  %806 = vmatprep.subr.bf16.mxu0 (!%p760_p5), %v1225_v3  ;;  %v807_v4 = vpack.c.bf16 (!%p760_p5), %v379_v1, %v378_v0  ;;  %v381_v5 = vld [vmem:[#allocation6 + $0x18] sm:$0xff] (!%p760_p5)  ;;  %792 = vmatprep.mubr.msk.f32.mxu0 (!%p760_p5), %vm1226_vm0, %v1227_v6  ;;  %vm389_vm1 = vcmask (!%p760_p5), 261120   ;;  %s1761_s22 = sld [smem:[#allocation27_spill]] (!%p760_p5) }
  0x9e   : > { %s372_s15 = scalar_lea.vmem %s1760_s17, %s1579_s27  ;;  %v810_v7 = vpack.c.bf16 (!%p760_p5), %v381_v5, %v380_v2  ;;  %v377_v8 = vld [vmem:[%s318_s20] sm:$0xff] (!%p760_p5)  ;;  %s1762_s29 = sld [smem:[#allocation28_spill]] (!%p760_p5) }
  0x9f   : > { %808 = vmatpush3.bf16.msra.mxu0 (!%p760_p5), %v807_v4  ;;  %s1763_s23 = sld [smem:[#allocation29_spill]] (!%p760_p5) }
  0xa0   : > { %809 = vmatprep.subr.bf16.mxu0 (!%p760_p5), %v1225_v3 }
  0xa3   : > { %811 = vmatpush3.bf16.msra.mxu0 (!%p760_p5), %v810_v7  ;;  %v761_v9 = vld [vmem:[%s1761_s22] ss:$0 sm:$0xff] (!%p760_p5) }
  0xa4   : > { %v765_v48 = vld [vmem:[%s1762_s29] ss:$0 sm:$0xff] }
  0xa5   : > { %v766_v50 = vld [vmem:[%s1763_s23] ss:$0 sm:$0xff] }
  0xa6   : > { %793 = vmatmul.mubr.msk.f32.vlgmr.msra.gmra.mrb[0].mxu0 %vm389_vm1, %v377_v8 }
 0x179   : > { %v459_v10 = vpop.f32.mrb[0].mxu0 }
 0x17a   : > { %v460_v11 = vadd.f32 %v761_v9, %v459_v10  ;;  %v794_v12 = vpop.f32.mrb[1].mxu0 }
 0x17c   : > { %v463_v13 = vmul.f32 0.70710677, %v460_v11  ;;  %v487_v35 = vmul.f32 0.5, %v460_v11 }
 0x17e   : > { %v464_v14 = vand.u32 2147483647, %v463_v13  ;;  %vm484_vm2 = vcmp.ge.f32.partialorder %v463_v13, 0.0 }
 0x180   : > { %v465_v15 = vmul.f32 0.3275911, %v464_v14  ;;  %v478_v17 = vsub.f32 0.0, %v464_v14 }
 0x182   : > { %v466_v16 = vadd.f32 1.0, %v465_v15  ;;  %v479_v19 = vmul.f32 %v478_v17, %v464_v14 }
 0x184   : > { %969 = vrcp.f32 %v466_v16  ;;  %v480_v22 = vmul.f32 1.442695, %v479_v19 }
 0x186   : > { %971 = vpow2.f32 %v480_v22 }
 0x18e   : > { %v970_v18 = vpop.eup %969 }
 0x18f   : > { %v469_v20 = vmul.f32 1.0614054, %v970_v18 }
 0x190   : > { %v972_v30 = vpop.eup %971 }
 0x191   : > { %v763_v21 = vadd.f32 -1.4531521, %v469_v20 }
 0x193   : > { %v471_v23 = vmul.f32 %v970_v18, %v763_v21 }
 0x195   : > { %v472_v24 = vadd.f32 1.4214138, %v471_v23 }
 0x197   : > { %v473_v25 = vmul.f32 %v970_v18, %v472_v24 }
 0x199   : > { %v764_v26 = vadd.f32 -0.28449672, %v473_v25 }
 0x19b   : > { %v475_v27 = vmul.f32 %v970_v18, %v764_v26 }
 0x19d   : > { %v476_v28 = vadd.f32 0.2548296, %v475_v27 }
 0x19f   : > { %v477_v29 = vmul.f32 %v970_v18, %v476_v28 }
 0x1a1   : > { %v482_v31 = vmul.f32 %v972_v30, %v477_v29 }
 0x1a3   : > { %v483_v32 = vsub.f32 1.0, %v482_v31 }
 0x1a5   : > { %v485_v33 = vsub.f32 0.0, %v483_v32 }
 0x1a7   : > { %v486_v34 = vsel %vm484_vm2, %v483_v32, %v485_v33 }
 0x1a8   : > { %v488_v36 = vadd.f32 1.0, %v486_v34 }
 0x1aa   : > { %v489_v37 = vmul.f32 %v488_v36, %v487_v35 }
 0x1ac   : > { %v490_v38 = vsel %vm389_vm1, %v489_v37, 0.0 }
 0x1ad   : > { %491 = vadd.xlane.f32.xlu0 %v490_v38 }
 0x23a   : > { %v492_v39 = vpop.xlane.xlu0 %491 }
 0x23b   : > { %v494_v40 = vmul.f32 0.03125, %v492_v39 }
 0x23d   : > { %v495_v41 = vsub.f32 %v489_v37, %v494_v40 }
 0x23f   : > { %v496_v42 = vmul.f32 %v495_v41, %v495_v41 }
 0x241   : > { %v497_v43 = vsel %vm389_vm1, %v496_v42, 0.0 }
 0x242   : > { %498 = vadd.xlane.f32.xlu0 %v497_v43 }
 0x2cf   : > { %v499_v44 = vpop.xlane.xlu0 %498 }
 0x2d0   : > { %v500_v45 = vmul.f32 0.03125, %v499_v44 }
 0x2d2   : > { %v501_v46 = vadd.f32 1e-12, %v500_v45 }
 0x2d4   : > { %973 = vrsqrt.f32 %v501_v46 }
 0x2de   : > { %v974_v47 = vpop.eup %973 }
 0x2df   : > { %v503_v49 = vmul.f32 %v974_v47, %v495_v41 }
 0x2e1   : > { %v511_v51 = vmul.f32 %v765_v48, %v503_v49 }
 0x2e3   : > { %v519_v52 = vadd.f32 %v766_v50, %v511_v51 }
 0x2e5   : > { %520 = vst.msk [vmem:[#allocation2] sm:$0xff] %vm389_vm1, %v519_v52 }
 0x2e6 PF: > { %v522_v53 = vld [vmem:[%s1566_s3] sm:$0xff]  ;;  %v523_v54 = vld [vmem:[%s1566_s3 + $0x8] sm:$0xff]  ;;  %s1764_s20 = sld [smem:[#allocation18_spill]]  ;;  %v524_v55 = vld [vmem:[%s1566_s3 + $0x10] sm:$0xff]  ;;  %s1765_s0 = sld [smem:[#allocation17_spill]]  ;;  %v1228_v56 = vmov 0.0|0.0  }
 0x2e7   : > { %812 = vmatprep.subr.bf16.mxu0 %v1228_v56  ;;  %v813_v57 = vpack.c.bf16 %v523_v54, %v522_v53  ;;  %v525_v58 = vld [vmem:[%s1566_s3 + $0x18] sm:$0xff]  ;;  %vm1229_vm3 = vmmov 0   ;;  %v1230_v59 = vmov 0.0   ;;  %vm533_vm4 = vcmask 261120   ;;  %v767_v62 = vld [vmem:[%s372_s15] ss:$0 sm:$0xff] }
 0x2e8   : > { %803 = vmatprep.mubr.msk.f32.mxu0 %vm1229_vm3, %v1230_v59  ;;  %v816_v60 = vpack.c.bf16 %v525_v58, %v524_v55  ;;  %s624_s10 = sshll.u32 %s369_s21, 4  ;;  %s1767_s13 = sld [smem:[#allocation31_spill]]  ;;  %s1620_s10 = int_to_ptr.vmem [resolvable:$true] %s624_s10 }
 0x2e9   : > { %814 = vmatpush3.bf16.msra.mxu0 %v813_v57  ;;  %s609_s27 = scalar_lea.sflag [#allocation5], %s367_s18  ;;  %s1063_s15 = scalar_lea.vmem %s1620_s10, 128 }
 0x2ea   : > { %815 = vmatprep.subr.bf16.mxu0 %v1228_v56  ;;  %p1064_p6 = scmp.ne.s32.totalorder %s1620_s10, %s1063_s15  ;;  %p1769_p7 = scmp.ne.s32.totalorder %s1749_s19, 0 }
 0x2eb   : > { %s1231_s29 = smov [#allocation9]  }
 0x2ec   : > { %v521_v61 = vld [vmem:[#allocation2] sm:$0xff]  ;;  %s770_s2 = sshll.u32 %s1764_s20, 1  ;;  %p1065_p9 = pnand %p1064_p6, %p1769_p7 }
 0x2ed   : > { %817 = vmatpush3.bf16.msra.mxu0 %v816_v60  ;;  %s620_s16 = sadd.s32 %s1765_s0, %s770_s2  ;;  %s1067_s9 = sshll.u32 %s1231_s29, 4  ;;  %s1068_s9 = int_to_ptr.vmem [resolvable:$false] %s1067_s9 }
 0x2ee   : > { %s771_s3 = sshll.u32 %s620_s16, 7  ;;  %s1768_s23 = smov %s1767_s13 }
 0x2ef   : > { %s1618_s26 = scalar_lea.hbm %s1767_s13, %s771_s3  ;;  %p1066_p0 = pneg %p1065_p9 }
 0x2f0   : > { %804 = vmatmul.mubr.msk.f32.vlgmr.msra.gmra.mrb[0].mxu0 %vm533_vm4, %v521_v61  ;;  %s1069_s12 = scalar_lea.vmem %s1068_s9, 256  ;;  %p1070_p11 = scmp.lt.s32.totalorder %s1620_s10, %s1068_s9 }
 0x2f1   : > { %p1071_p8 = scmp.lt.s32.totalorder %s1069_s12, %s1063_s15 }
 0x2f3   : > { %p1072_p3 = por %p1071_p8, %p1070_p11 }
 0x2f5   : > { %p1073_p10 = pnand %p1072_p3, %p1066_p0 }
 0x3c3   : > { %v603_v63 = vpop.f32.mrb[0].mxu0 }
 0x3c4   : > { %v604_v0 = vadd.f32 %v767_v62, %v603_v63  ;;  %v805_v1 = vpop.f32.mrb[1].mxu0 }
 0x3c6   : > { %607 = vst [vmem:[%s369_s21] sm:$0xff] %v604_v0 }
 0x3c7   : > { %1076 = shalt.err (!%p1073_p10)
}
 0x3c8   : > { %s1077_s18 = scalar_lea.hbm %s1618_s26, 128  ;;  %s1081_s20 = scalar_lea.hbm %s1768_s23, 512 }
 0x3c9   : > { %p1078_p12 = scmp.ne.s32.totalorder %s1618_s26, %s1077_s18  ;;  %p1082_p13 = scmp.lt.u32.totalorder %s1618_s26, %s1768_s23 }
 0x3ca   : > { %p1083_p1 = scmp.lt.u32.totalorder %s1081_s20, %s1077_s18  ;;  %p1085_p6 = scmp.lt.u32.totalorder %s1077_s18, %s1618_s26 }
 0x3cb   : > { %p1079_p4 = pnand %p1078_p12, %p1769_p7 }
 0x3cc   : > { %p1084_p5 = por %p1083_p1, %p1082_p13 }
 0x3cd   : > { %p1080_p2 = pneg %p1079_p4 }
 0x3ce   : > { %p1086_p9 = por %p1085_p6, %p1084_p5 }
 0x3d0   : > { %p1087_p0 = pnand %p1086_p9, %p1080_p2 }
 0x3d2   : > { %1090 = shalt.err (!%p1087_p0)
}
 0x3d3   : > { %826 = dma.vmem_to_hbm [thread:$0]  (%p1769_p7), %s1620_s10, 128, %s1618_s26, %s609_s27  }
 0x3d4 PF: > { %p846_p11 = scmp.ge.s32.totalorder %s1217_s14, 2  ;;  %s636_s16 = sand.u32 1, %s1165_s24  }
 0x3d5   : > { %p1770_p8 = scmp.ne.s32.totalorder %s1750_s30, 0  ;;  %s637_s7 = scalar_lea.sflag [#allocation5], %s636_s16 }
 0x3d7   : > { %p840_p3 = pnand %p846_p11, %p1770_p8 }
 0x3d9   : > { %1160 = dma.done.wait (!%p840_p3), %s637_s7, 128  }
 0x3da   : > { %1162 = vsyncadd (!%p840_p3), %s637_s7, 4294967168  ;;  %s24_s14 = sadd.s32 1, %s1217_s14   ;;  %s1772_s19 = sld [smem:[#allocation14_spill]] }
 0x3db   : > { %p1652_p10 = scmp.ge.s32.totalorder %s24_s14, 6   ;;  %s1773_s26 = sld [smem:[#allocation25_spill]] }
 0x3dc   : > { %s1774_s17 = sld [smem:[#allocation15_spill]]  ;;  %s1775_s29 = sld [smem:[#allocation23_spill]] }
 0x3dd   : > { %s1776_s3 = sld [smem:[#allocation16_spill]]  ;;  %s1777_s9 = sld [smem:[#allocation24_spill]] }
 0x3de   : > { %s1778_s10 = sld [smem:[#allocation19_spill]]  ;;  %s1779_s11 = sld [smem:[#allocation20_spill]] }
 0x3df   : > { %s1780_s12 = sld [smem:[#allocation21_spill]]  ;;  %s1781_s13 = sld [smem:[#allocation22_spill]] }
 0x3e0   : > { %s1782_s24 = smov %s1169_s25  ;;  %s1783_s25 = smov %s1772_s19 }
 0x3e1   : > { %s1784_s27 = smov %s1181_s28  ;;  %s1786_s30 = smov %s1193_s8 }
 0x3e2   : > { %s1785_s28 = smov %s1774_s17  ;;  %23 = sbr.rel (!%p1652_p10) target bundleno = 18 (0x12), region = 115 }
 0x3e3   : > { %s1787_s8 = smov %s1776_s3 }
 0x3e9   :  { %642 = vsyncpa [#allocation4], 1 }
 0x3ea   :  { %644 = vsyncpa [#allocation4 + $0x1], 1 }
 0x3eb   :  { %645 = vsyncpa [#allocation7], 1 }
 0x3ec   :  { %646 = vsyncpa [#allocation5], 1 }
 0x3ed   :  { %648 = vsyncpa [#allocation5 + $0x1], 1 }

</bundles_post_ra>
